<compile_context>
chip_gen: v5e
topology: v5e:2x2
jax: 0.10.0
libtpu: 0.0.40
codegen_flags: <defaults>
</compile_context>

<pallas_src>
import jax
import jax.numpy as jnp
import numpy as np
from jax.experimental import pallas as pl
from jax.experimental.pallas import tpu as pltpu


def latent_kernel(log_sigma_ref, temp_ref, z_ref, et_ref, u_row_ref, loss_ref):
    z = z_ref[...].astype(jnp.float32)            # (N, D)
    e_t = et_ref[...].astype(jnp.float32)         # (M, M) == e.T
    u_row = u_row_ref[...].astype(jnp.float32)    # (1, D)
    temp = temp_ref[0]                            # scalar temperature
    log_sigma = log_sigma_ref[0]                  # scalar parameter

    n = z_ref.shape[0]
    m = et_ref.shape[0]

    # z_proj = z @ u computed on the VPU: elementwise multiply + lane reduce.
    z_proj = jnp.sum(z * u_row, axis=-1, keepdims=True)               # (N, 1)

    # (e @ e)^T = e.T @ e.T : single MXU matmul on the pre-transposed input,
    # so row statistics of (e @ e) are cheap sublane reductions -> (1, M).
    e_proj_t = jnp.dot(e_t, e_t, preferred_element_type=jnp.float32)  # (M, M)
    row_sum = jnp.sum(e_proj_t, axis=0, keepdims=True)                # (1, M)
    row_sq = jnp.sum(e_proj_t * e_proj_t, axis=0, keepdims=True)      # (1, M)

    # distance[i, j] = sum_k (z_proj[i] - (e@e)[j, k])^2
    #               = M*z_proj[i]^2 - 2*z_proj[i]*row_sum[j] + row_sq[j]
    zp2 = z_proj * z_proj
    distance = jnp.float32(m) * zp2 - 2.0 * z_proj * row_sum + row_sq  # (N, M)

    # alpha = -1 / (2 * exp(log_sigma)^2)
    alpha = -0.5 * jnp.exp(-2.0 * log_sigma)
    scaled = (alpha / temp) * distance                                 # (N, M)

    # logsumexp over the sample axis (axis 0), max-shifted for stability.
    mmax = jnp.max(scaled, axis=0, keepdims=True)                      # (1, M)
    lse = mmax + jnp.log(jnp.sum(jnp.exp(scaled - mmax), axis=0,
                                 keepdims=True))                       # (1, M)

    loss = -jnp.mean(temp * lse)
    # np.log(np.e) == 1.0 in the reference module
    loss = loss + 0.5 * (2.0 * log_sigma - 1.0) + jnp.float32(np.log(n))
    loss_ref[0] = loss


def latent_lse_loss(z, e, u, log_sigma, temperature=1.0):
    """Returns the (1,)-shaped 'lse_loss' produced by Latent.forward."""
    n, d = z.shape
    m = e.shape[0]
    temp = jnp.asarray([temperature], jnp.float32)

    # Wrapper-side layout plumbing (outside the kernel):
    e_t = jnp.transpose(e)              # (M, M) so row-stats are sublane reduces
    u_row = jnp.reshape(u, (1, d))      # (1, D) row for the VPU projection

    cost = pl.CostEstimate(
        flops=2 * m * m * m + 2 * n * d + 10 * n * m + 4 * m * m,
        transcendentals=n * m + m + 2,
        bytes_accessed=4 * (n * d + m * m + d + 3),
    )

    loss = pl.pallas_call(
        latent_kernel,
        out_shape=jax.ShapeDtypeStruct((1,), jnp.float32),
        in_specs=[
            pl.BlockSpec(memory_space=pltpu.MemorySpace.SMEM),  # log_sigma
            pl.BlockSpec(memory_space=pltpu.MemorySpace.SMEM),  # temperature
            pl.BlockSpec(memory_space=pltpu.MemorySpace.VMEM),  # z
            pl.BlockSpec(memory_space=pltpu.MemorySpace.VMEM),  # e.T
            pl.BlockSpec(memory_space=pltpu.MemorySpace.VMEM),  # u (row)
        ],
        out_specs=pl.BlockSpec(memory_space=pltpu.MemorySpace.SMEM),
        cost_estimate=cost,
    )(log_sigma.astype(jnp.float32), temp, z, e_t, u_row)
    return loss


def reference(z, e, u, log_sigma, temperature):
    """Pure-JAX transcription of the PyTorch forward (for verification)."""
    T = temperature
    z_proj = z @ u                                                  # (N, 1)
    e_proj = e @ e                                                  # (M, M)
    distance = jnp.sum(
        (z_proj[:, None, :] - e_proj[None, :, :]) ** 2, axis=2)    # (N, M)
    alpha = -1.0 / (2.0 * jnp.exp(log_sigma) ** 2)
    lse = jax.scipy.special.logsumexp(alpha * distance / T, axis=0)
    loss = -jnp.mean(T * lse)
    return loss + 0.5 * (2.0 * log_sigma - np.log(np.e)) + np.log(z.shape[0])


if __name__ == "__main__":
    key = jax.random.PRNGKey(0)
    kz, ke, ku = jax.random.split(key, 3)

    N, z_dim, M = 8, 32, 16
    z = jax.random.normal(kz, (N, z_dim), jnp.float32)
    e = jax.random.normal(ke, (M, M), jnp.float32)

    # u = randn(z_dim, 1), normalized along dim 0 exactly as in the module.
    u = jax.random.normal(ku, (z_dim, 1), jnp.float32)
    u = u / jnp.linalg.norm(u, axis=0)

    # __init__: log_sigma = ones(1) * init_log_sigma
    init_log_sigma = 0.0
    log_sigma = jnp.ones((1,), jnp.float32) * init_log_sigma
    temperature = 1.0

    loss = latent_lse_loss(z, e, u, log_sigma, temperature)
    loss = jax.block_until_ready(loss)

    ref = reference(z, e, u, log_sigma, temperature)
    assert loss.shape == (1,)
    assert np.allclose(np.asarray(loss), np.asarray(ref), rtol=1e-4, atol=1e-4), (
        loss, ref)
    print("KERNEL_OK")
</pallas_src>

<mosaic_0001>
module attributes {stable_mosaic.version = 11 : i64} {
  func.func @latent_kernel(%arg0: memref<1xf32, #tpu.memory_space<smem>>, %arg1: memref<1xf32, #tpu.memory_space<smem>>, %arg2: memref<8x32xf32, #tpu.memory_space<vmem>>, %arg3: memref<16x16xf32, #tpu.memory_space<vmem>>, %arg4: memref<1x32xf32, #tpu.memory_space<vmem>>, %arg5: memref<1xf32, #tpu.memory_space<smem>>) attributes {dimension_semantics = [], scalar_prefetch = 0 : i64, scratch_operands = 0 : i64, tpu.core_type = #tpu.core_type<tc>} {
    %c0 = arith.constant 0 : index
    %c0_0 = arith.constant 0 : index
    %0 = vector.load %arg2[%c0, %c0_0] : memref<8x32xf32, #tpu.memory_space<vmem>>, vector<8x32xf32>
    %c0_1 = arith.constant 0 : index
    %c0_2 = arith.constant 0 : index
    %1 = vector.load %arg3[%c0_1, %c0_2] : memref<16x16xf32, #tpu.memory_space<vmem>>, vector<16x16xf32>
    %c0_3 = arith.constant 0 : index
    %c0_4 = arith.constant 0 : index
    %2 = vector.load %arg4[%c0_3, %c0_4] : memref<1x32xf32, #tpu.memory_space<vmem>>, vector<1x32xf32>
    %c0_5 = arith.constant 0 : index
    %3 = memref.load %arg1[%c0_5] : memref<1xf32, #tpu.memory_space<smem>>
    %c0_6 = arith.constant 0 : index
    %4 = memref.load %arg0[%c0_6] : memref<1xf32, #tpu.memory_space<smem>>
    %5 = vector.broadcast %2 : vector<1x32xf32> to vector<8x32xf32>
    %6 = arith.mulf %0, %5 : vector<8x32xf32>
    %cst = arith.constant dense<0.000000e+00> : vector<8xf32>
    %7 = vector.multi_reduction <add>, %6, %cst [1] : vector<8x32xf32> to vector<8xf32>
    %8 = vector.shape_cast %7 : vector<8xf32> to vector<8x1xf32>
    %cst_7 = arith.constant dense<0.000000e+00> : vector<16x16xf32>
    %9 = tpu.matmul %1, %1, %cst_7 {dimension_numbers = #tpu.dot_dimension_numbers<[1], [0], [0], [1], [0, 0, 1, 1], [], []>} : vector<16x16xf32>, vector<16x16xf32>, vector<16x16xf32> -> vector<16x16xf32>
    %cst_8 = arith.constant dense<0.000000e+00> : vector<16xf32>
    %10 = vector.multi_reduction <add>, %9, %cst_8 [0] : vector<16x16xf32> to vector<16xf32>
    %11 = vector.shape_cast %10 : vector<16xf32> to vector<1x16xf32>
    %12 = arith.mulf %9, %9 : vector<16x16xf32>
    %cst_9 = arith.constant dense<0.000000e+00> : vector<16xf32>
    %13 = vector.multi_reduction <add>, %12, %cst_9 [0] : vector<16x16xf32> to vector<16xf32>
    %14 = vector.shape_cast %13 : vector<16xf32> to vector<1x16xf32>
    %15 = arith.mulf %8, %8 : vector<8x1xf32>
    %cst_10 = arith.constant 1.600000e+01 : f32
    %16 = vector.broadcast %cst_10 : f32 to vector<8x1xf32>
    %17 = arith.mulf %16, %15 : vector<8x1xf32>
    %cst_11 = arith.constant 2.000000e+00 : f32
    %18 = vector.broadcast %cst_11 : f32 to vector<8x1xf32>
    %19 = arith.mulf %18, %8 : vector<8x1xf32>
    %20 = vector.broadcast %19 : vector<8x1xf32> to vector<8x16xf32>
    %21 = vector.broadcast %11 : vector<1x16xf32> to vector<8x16xf32>
    %22 = arith.mulf %20, %21 : vector<8x16xf32>
    %23 = vector.broadcast %17 : vector<8x1xf32> to vector<8x16xf32>
    %24 = arith.subf %23, %22 : vector<8x16xf32>
    %25 = vector.broadcast %14 : vector<1x16xf32> to vector<8x16xf32>
    %26 = arith.addf %24, %25 : vector<8x16xf32>
    %cst_12 = arith.constant -2.000000e+00 : f32
    %27 = arith.mulf %cst_12, %4 : f32
    %28 = math.exp %27 : f32
    %cst_13 = arith.constant -5.000000e-01 : f32
    %29 = arith.mulf %cst_13, %28 : f32
    %30 = arith.divf %29, %3 : f32
    %31 = vector.broadcast %30 : f32 to vector<8x16xf32>
    %32 = arith.mulf %31, %26 : vector<8x16xf32>
    %cst_14 = arith.constant dense<0xFF800000> : vector<16xf32>
    %33 = vector.multi_reduction <maximumf>, %32, %cst_14 [0] : vector<8x16xf32> to vector<16xf32>
    %34 = vector.shape_cast %33 : vector<16xf32> to vector<1x16xf32>
    %35 = vector.broadcast %34 : vector<1x16xf32> to vector<8x16xf32>
    %36 = arith.subf %32, %35 : vector<8x16xf32>
    %37 = math.exp %36 : vector<8x16xf32>
    %cst_15 = arith.constant dense<0.000000e+00> : vector<16xf32>
    %38 = vector.multi_reduction <add>, %37, %cst_15 [0] : vector<8x16xf32> to vector<16xf32>
    %39 = vector.shape_cast %38 : vector<16xf32> to vector<1x16xf32>
    %40 = math.log %39 : vector<1x16xf32>
    %41 = arith.addf %34, %40 : vector<1x16xf32>
    %42 = vector.broadcast %3 : f32 to vector<1x16xf32>
    %43 = arith.mulf %42, %41 : vector<1x16xf32>
    %44 = vector.shape_cast %43 : vector<1x16xf32> to vector<1x1x16xf32>
    %cst_16 = arith.constant dense<0.000000e+00> : vector<1xf32>
    %45 = vector.multi_reduction <add>, %44, %cst_16 [1, 2] : vector<1x1x16xf32> to vector<1xf32>
    %46 = vector.shape_cast %45 : vector<1xf32> to vector<1x1x1xf32>
    %47 = vector.extract %46[0, 0, 0] : f32 from vector<1x1x1xf32>
    %cst_17 = arith.constant 1.600000e+01 : f32
    %48 = arith.divf %47, %cst_17 : f32
    %cst_18 = arith.constant 0.000000e+00 : f32
    %49 = arith.subf %cst_18, %48 : f32
    %cst_19 = arith.constant 2.000000e+00 : f32
    %50 = arith.mulf %cst_19, %4 : f32
    %cst_20 = arith.constant 1.000000e+00 : f32
    %51 = arith.subf %50, %cst_20 : f32
    %cst_21 = arith.constant 5.000000e-01 : f32
    %52 = arith.mulf %cst_21, %51 : f32
    %53 = arith.addf %49, %52 : f32
    %cst_22 = arith.constant 2.07944155 : f32
    %54 = arith.addf %53, %cst_22 : f32
    %c0_23 = arith.constant 0 : index
    %55 = memref.load %arg5[%c0_23] : memref<1xf32, #tpu.memory_space<smem>>
    memref.store %54, %arg5[%c0_23] : memref<1xf32, #tpu.memory_space<smem>>
    return
  }
}

</mosaic_0001>

<bundles_post_ra>
// kernel: tpu_custom_call.1
= control target key start
LH: loop header
LB: loop body
LE: loop exit
PB: predicated region body
PF: predicated region fallthrough
CT: control target
= control target key end

     0   :  { %12 = vsyncpa [#allocation5], 0  ;;  %s386_s0 = inlined_call_operand.<no memory space> [shape: f32[1], index: 0, kind: input, shape index: {}]   ;;  %s387_s1 = inlined_call_operand.<no memory space> [shape: f32[1], index: 1, kind: input, shape index: {}]   ;;  %s388_s2 = inlined_call_operand.hbm [shape: f32[8,32], index: 2, kind: input, shape index: {}]   ;;  %s389_s3 = inlined_call_operand.hbm [shape: f32[16,16], index: 3, kind: input, shape index: {}]   ;;  %s390_s4 = inlined_call_operand.vmem [shape: f32[1,32], index: 4, kind: input, shape index: {}]   ;;  %s391_s5 = inlined_call_operand.hbm [shape: f32[1], index: 5, kind: output, shape index: {}]  }
   0x1   :  { %13 = vsyncpa [#allocation8], 0 }
   0x2   :  { %14 = vsyncpa [#allocation6], 0  ;;  %s24_s20 = sshll.u32 %s388_s2, 4  ;;  %s311_s21 = smov [#allocation4]   ;;  %s25_s20 = int_to_ptr.hbm [resolvable:$true] %s24_s20 }
   0x3   :  { %s26_s22 = sshll.u32 %s311_s21, 4  ;;  %s34_s25 = sshll.u32 %s389_s3, 4  ;;  %s27_s22 = int_to_ptr.vmem [resolvable:$true] %s26_s22  ;;  %s35_s25 = int_to_ptr.hbm [resolvable:$true] %s34_s25 }
   0x4   :  { %29 = dma.hbm_to_vmem [thread:$0]  %s25_s20, 128, %s27_s22, [#allocation5]  }
   0x5   :  { %s312_s26 = smov [#allocation7]   ;;  %s313_s28 = smov 128  }
   0x6   :  { %s36_s27 = sshll.u32 %s312_s26, 4  ;;  %s314_s29 = smov 8   ;;  %s37_s27 = int_to_ptr.vmem [resolvable:$true] %s36_s27 }
   0x7   :  { %42 = dma.hbm_to_vmem [thread:$0]  %s35_s25, 256, %s37_s27, [#allocation8], %s313_s28, %s313_s28, %s314_s29  }
   0x8   :  { %305 = dma.done.wait [#allocation5], 128  }
   0x9   :  { %306 = vsyncadd [#allocation5], 4294967168 }
   0xa   :  { %307 = dma.done.wait [#allocation8], 256  }
   0xb   :  { %308 = vsyncadd [#allocation8], 4294967040  ;;  %s123_s6 = smul.f32 -2.0, %s386_s0  ;;  %v359_v0 = vstv %s387_s1  ;;  %v55_v4 = vld [vmem:[#allocation7 + $0x8] sm:$0xff]  ;;  %v54_v5 = vld [vmem:[#allocation7] sm:$0xff]  ;;  %vm67_vm0 = vcmask 130048  }
   0xc   :  { %235 = vrcp.f32 %v359_v0  ;;  %v53_v6 = vld [vmem:[#allocation4] sm:$0xff]  ;;  %88 = vmatpush.msra.mxu0 %v55_v4  ;;  %218 = vmatpush.msra.mxu1 %v55_v4  ;;  %vm63_vm1 = vcmask 261120   ;;  %vm135_vm2 = vweird.f32 %v359_v0  ;;  %v141_v9 = vand.u32 2147483648, %v359_v0  ;;  %s191_s14 = smul.f32 2.0, %s386_s0  ;;  %s203_s23 = sshll.u32 %s391_s5, 4  ;;  %s204_s23 = int_to_ptr.hbm [resolvable:$true] %s203_s23 }
   0xd   :  { %v124_v1 = vstv %s123_s6  ;;  %v234_v7 = vld [vmem:[%s390_s4] ss:$0 sm:$0xff]  ;;  %v139_v12 = vand.u32 2147483647, %v359_v0  ;;  %vm170_vm6 = vcmask 122880   ;;  %s316_s26 = smov [#allocation9]  }
   0xe   :  { %v125_v2 = vmul.f32 1.442695, %v124_v1  ;;  %89 = vmatpush.msra.mxu0 %v54_v5  ;;  %219 = vmatpush.msra.mxu1 %v54_v5  ;;  %v62_v10 = vmul.f32 %v234_v7, %v53_v6  ;;  %v142_v16 = vor.u32 1.1754944e-38, %v141_v9  ;;  %s217_s15 = sadd.f32 -1.0, %s191_s14 }
   0xf   :  { %215 = vmatmul.msk.f32.vlgmr.msra.gmra.mxu0 %vm67_vm0, %v54_v5  ;;  %216 = vmatmul.msk.f32.vlgmr.msra.gmra.mxu1 %vm67_vm0, %v55_v4  ;;  %vm140_vm5 = vcmp.eq.f32.partialorder %v139_v12, 8.507059e+37 }
  0x10   :  { %237 = vpow2.f32 %v125_v2  ;;  %v64_v14 = vsel %vm63_vm1, %v62_v10, 0.0  ;;  %v315_v10 = vmov 16.0   ;;  %s193_s18 = smul.f32 0.5, %s217_s15 }
  0x11   :  { %65 = vadd.xlane.f32.xlu0 %v64_v14 }
  0x12   :  { %v236_v3 = vpop.eup %235 }
  0x13   :  { %v131_v8 = vmul.f32 %v236_v3, %v359_v0  ;;  %vm136_vm3 = vweird.f32 %v236_v3 }
  0x14   :  { %vm137_vm4 = vmor %vm135_vm2, %vm136_vm3 }
  0x15   :  { %v132_v11 = vsub.f32 1.0, %v131_v8 }
  0x16   :  { %v238_v13 = vpop.eup %237 }
  0x17   :  { %220 = vpush %v238_v13  ;;  %v133_v15 = vmul.f32 %v236_v3, %v132_v11 }
  0x19   :  { %v134_v17 = vadd.f32 %v236_v3, %v133_v15 }
  0x1b   :  { %v138_v18 = vsel %vm137_vm4, %v236_v3, %v134_v17 }
  0x1c   :  { %v143_v19 = vsel %vm140_vm5, %v142_v16, %v138_v18 }
  0x1d   :  { %222 = vpush %v143_v19 }
  0x48   :  { %s221_s1 = spop %220 }
  0x49   :  { %s128_s4 = smul.f32 -0.5, %s221_s1 }
  0x4e   :  { %s223_s10 = spop %222 }
  0x4f   :  { %s145_s11 = smul.f32 %s223_s10, %s128_s4 }
  0x51   :  { %v146_v48 = vstv %s145_s11 }
  0x84   :  { %v66_v33 = vpop.xlane.xlu0 %65 }
  0x85   :  { %v117_v38 = vmul.f32 %v66_v33, %v66_v33  ;;  %v119_v41 = vmul.f32 2.0, %v66_v33 }
  0x87   :  { %v118_v43 = vmul.f32 16.0, %v117_v38 }
  0x8c   :  { %v91_v20 = vpop.f32.mrf.mxu0  ;;  %v94_v21 = vpop.f32.mrf.mxu1 }
  0x8d   :  { %v97_v22 = vsel %vm67_vm0, %v91_v20, 0.0  ;;  %v106_v23 = vmul.f32 %v91_v20, %v91_v20  ;;  %v98_v24 = vsel %vm67_vm0, %v94_v21, 0.0  ;;  %v107_v25 = vmul.f32 %v94_v21, %v94_v21 }
  0x8e   :  { %v99_v26 = vadd.f32 %v98_v24, %v97_v22 }
  0x8f   :  { %v108_v27 = vsel %vm67_vm0, %v106_v23, 0.0  ;;  %v109_v28 = vsel %vm67_vm0, %v107_v25, 0.0 }
  0x90   :  { %v100_v29 = vrot.slane %v99_v26, 4  ;;  %v110_v30 = vadd.f32 %v109_v28, %v108_v27 }
  0x92   :  { %v101_v31 = vadd.f32 %v100_v29, %v99_v26  ;;  %v111_v32 = vrot.slane %v110_v30, 4 }
  0x94   :  { %v102_v34 = vrot.slane %v101_v31, 2  ;;  %v112_v35 = vadd.f32 %v111_v32, %v110_v30 }
  0x96   :  { %v103_v36 = vadd.f32 %v102_v34, %v101_v31  ;;  %v113_v37 = vrot.slane %v112_v35, 2 }
  0x98   :  { %v104_v39 = vrot.slane %v103_v36, 1  ;;  %v114_v40 = vadd.f32 %v113_v37, %v112_v35 }
  0x9a   :  { %v105_v42 = vadd.f32 %v104_v39, %v103_v36  ;;  %v115_v44 = vrot.slane %v114_v40, 1 }
  0x9c   :  { %v120_v45 = vmul.f32 %v119_v41, %v105_v42  ;;  %v116_v47 = vadd.f32 %v115_v44, %v114_v40 }
  0x9e   :  { %v121_v46 = vsub.f32 %v118_v43, %v120_v45 }
  0xa0   :  { %v122_v49 = vadd.f32 %v121_v46, %v116_v47 }
  0xa2   :  { %v147_v50 = vmul.f32 %v146_v48, %v122_v49 }
  0xa4   :  { %v148_v51 = vsel %vm67_vm0, %v147_v50, -inf }
  0xa5   :  { %v149_v52 = vrot.slane %v148_v51, 4 }
  0xa7   :  { %v150_v53 = vmax.f32 %v148_v51, %v149_v52 }
  0xa9   :  { %v151_v54 = vrot.slane %v150_v53, 2 }
  0xab   :  { %v152_v55 = vmax.f32 %v150_v53, %v151_v54 }
  0xad   :  { %v153_v56 = vrot.slane %v152_v55, 1 }
  0xaf   :  { %v154_v57 = vmax.f32 %v152_v55, %v153_v56 }
  0xb1   :  { %v155_v58 = vsub.f32 %v147_v50, %v154_v57 }
  0xb3   :  { %v156_v59 = vmul.f32 1.442695, %v155_v58 }
  0xb5   :  { %239 = vpow2.f32 %v156_v59 }
  0xbb   :  { %v240_v60 = vpop.eup %239 }
  0xbc   :  { %v158_v61 = vsel %vm67_vm0, %v240_v60, 0.0 }
  0xbd   :  { %v159_v62 = vrot.slane %v158_v61, 4 }
  0xbf   :  { %v160_v63 = vadd.f32 %v159_v62, %v158_v61 }
  0xc1   :  { %v161_v1 = vrot.slane %v160_v63, 2 }
  0xc3   :  { %v162_v2 = vadd.f32 %v161_v1, %v160_v63 }
  0xc5   :  { %v163_v3 = vrot.slane %v162_v2, 1 }
  0xc7   :  { %v164_v4 = vadd.f32 %v163_v3, %v162_v2 }
  0xc9   :  { %241 = vlog2.f32 %v164_v4 }
  0xca   :  { %243 = vrcp.f32 %v315_v10 }
  0xcf   :  { %v242_v5 = vpop.eup %241 }
  0xd0   :  { %v166_v6 = vmul.f32 0.6931472, %v242_v5  ;;  %v244_v11 = vpop.eup %243 }
  0xd1   :  { %v182_v12 = vmul.f32 16.0, %v244_v11  ;;  %vm186_vm7 = vweird.f32 %v244_v11 }
  0xd2   :  { %v167_v7 = vadd.f32 %v166_v6, %v154_v57 }
  0xd3   :  { %v183_v13 = vsub.f32 1.0, %v182_v12 }
  0xd4   :  { %v169_v8 = vmul.f32 %v167_v7, %v359_v0 }
  0xd5   :  { %v184_v17 = vmul.f32 %v244_v11, %v183_v13 }
  0xd6   :  { %v171_v9 = vsel %vm170_vm6, %v169_v8, 0.0 }
  0xd7   :  { %172 = vadd.xlane.f32.xlu0 %v171_v9  ;;  %v185_v20 = vadd.f32 %v244_v11, %v184_v17 }
  0xd9   :  { %v187_v23 = vsel %vm186_vm7, %v244_v11, %v185_v20 }
 0x14a   :  { %v173_v14 = vpop.xlane.xlu0 %172 }
 0x14b   :  { %v174_v15 = vrot.slane %v173_v14, 4 }
 0x14d   :  { %v175_v16 = vadd.f32 %v174_v15, %v173_v14 }
 0x14f   :  { %v176_v18 = vrot.slane %v175_v16, 2 }
 0x151   :  { %v177_v19 = vadd.f32 %v176_v18, %v175_v16 }
 0x153   :  { %v178_v21 = vrot.slane %v177_v19, 1 }
 0x155   :  { %v179_v22 = vadd.f32 %v178_v21, %v177_v19 }
 0x157   :  { %224 = vpush %v179_v22 }
 0x158   :  { %226 = vpush %v187_v23 }
 0x188   :  { %s225_s16 = spop %224 }
 0x189   :  { %s227_s17 = spop %226 }
 0x18a   :  { %s189_s19 = smul.f32 %s227_s17, %s225_s16 }
 0x18c   :  { %s190_s20 = ssub.f32 0.0, %s189_s19 }
 0x18e   :  { %s194_s24 = sadd.f32 %s193_s18, %s190_s20 }
 0x190   :  { %s195_s25 = sadd.f32 2.0794415, %s194_s24 }
 0x192   :  { %197 = sst [smem:[#allocation9]] %s195_s25 }
 0x193   :  { %206 = dma.smem_to_hbm %s316_s26, 16, %s204_s23, [#allocation6]  }
 0x194   :  { %309 = dma.done.wait [#allocation6], 16  }
 0x195   :  { %310 = vsyncadd [#allocation6], 4294967280 }
 0x196   :  { %211 = sfence }
 0x197   :  { %212 = vsyncpa [#allocation5], 1 }
 0x198   :  { %213 = vsyncpa [#allocation8], 1 }
 0x199   :  { %214 = vsyncpa [#allocation6], 1 }

</bundles_post_ra>
